<compile_context>
chip_gen: v7x
topology: tpu7x:2x2x1
jax: 0.10.0
libtpu: 0.0.40
codegen_flags: <defaults>
</compile_context>

<pallas_src>
import functools
import math

import jax
import jax.numpy as jnp
import numpy as np
from jax.experimental import pallas as pl
from jax.experimental.pallas import tpu as pltpu

LANES = 128
SUBLANES = 8
TARGET_TILE_BYTES = 2 * 1024 * 1024   # ~2 MiB per input per grid step
MAX_TILE_ROWS = 16384                 # cap for narrow dtypes


def _round_up(x, m):
    return ((x + m - 1) // m) * m


# ----------------------------------------------------------------------------
# Generic "sum of elem_fn(*inputs) over all elements" Pallas reduction kernel.
# ----------------------------------------------------------------------------
def _sum_kernel(elem_fn, n_inputs, tile_rows, valid_rows, rem_lanes,
                blocks_per_split, needs_mask, *refs):
    in_refs = refs[:n_inputs]
    o_ref = refs[n_inputs]           # (1, 8, 128) f32 block, resident across axis 1

    i = pl.program_id(1)

    @pl.when(i == 0)
    def _():
        o_ref[...] = jnp.zeros_like(o_ref)

    vals = elem_fn(*(r[...] for r in in_refs))          # (tile_rows, 128) f32

    if needs_mask:
        block_id = pl.program_id(0) * blocks_per_split + i
        row0 = block_id * tile_rows
        row_ids = row0 + jax.lax.broadcasted_iota(jnp.int32, (tile_rows, LANES), 0)
        mask = row_ids < valid_rows
        if rem_lanes:
            lane_ids = jax.lax.broadcasted_iota(jnp.int32, (tile_rows, LANES), 1)
            mask = mask & jnp.logical_not(
                (row_ids == valid_rows - 1) & (lane_ids >= rem_lanes))
        vals = jnp.where(mask, vals, 0.0)

    # Pure-VPU partial reduction: fold groups of 8 rows onto one (8,128) block.
    o_ref[...] += jnp.sum(
        vals.reshape(tile_rows // SUBLANES, SUBLANES, LANES),
        axis=0, keepdims=True)


def _pallas_sum(elem_fn, arrays, *, flops_per_elem, transcendentals_per_elem=0):
    """Returns sum(elem_fn(*arrays)) over all elements as an f32 scalar."""
    n = int(arrays[0].size)
    flats = [jnp.reshape(a, (-1,)) for a in arrays]

    # Pad (only when needed) so the slab is (rows, 128) with rows % 8 == 0.
    chunk = SUBLANES * LANES
    n_padded = _round_up(n, chunk)
    if n_padded != n:
        # TODO(synk): <1024-element zero pad copy, only hit when numel % 1024 != 0.
        flats = [jnp.pad(f, (0, n_padded - n)) for f in flats]
    rows = n_padded // LANES
    valid_rows = -(-n // LANES)
    rem_lanes = n % LANES

    itemsize = max(a.dtype.itemsize for a in arrays)
    tile_rows = min(MAX_TILE_ROWS,
                    max(SUBLANES, TARGET_TILE_BYTES // (LANES * itemsize)),
                    rows)                              # all multiples of 8

    total_blocks = -(-rows // tile_rows)
    num_splits = 2 if (total_blocks >= 2 and total_blocks % 2 == 0) else 1
    blocks_per_split = total_blocks // num_splits

    coverage_rows = num_splits * blocks_per_split * tile_rows
    needs_mask = (coverage_rows != valid_rows) or (rem_lanes != 0)

    mats = [jnp.reshape(f, (rows, LANES)) for f in flats]

    def in_index_map(s, i):
        return (s * blocks_per_split + i, 0)

    kernel = functools.partial(
        _sum_kernel, elem_fn, len(arrays), tile_rows, valid_rows, rem_lanes,
        blocks_per_split, needs_mask)

    bytes_in = sum(int(a.size) * a.dtype.itemsize for a in arrays)
    out = pl.pallas_call(
        kernel,
        out_shape=jax.ShapeDtypeStruct((num_splits, SUBLANES, LANES), jnp.float32),
        grid_spec=pltpu.PrefetchScalarGridSpec(
            num_scalar_prefetch=0,
            grid=(num_splits, blocks_per_split),
            in_specs=[pl.BlockSpec((tile_rows, LANES), in_index_map)
                      for _ in arrays],
            out_specs=pl.BlockSpec((1, SUBLANES, LANES), lambda s, i: (s, 0, 0)),
        ),
        compiler_params=pltpu.CompilerParams(
            dimension_semantics=("parallel", "arbitrary"),
            vmem_limit_bytes=32 * 1024 * 1024,
        ),
        cost_estimate=pl.CostEstimate(
            flops=flops_per_elem * n,
            transcendentals=transcendentals_per_elem * n,
            bytes_accessed=bytes_in + num_splits * SUBLANES * LANES * 4,
        ),
    )(*mats)

    return jnp.sum(out)    # tiny (<= 2*1024 elements) final reduce


# ----------------------------------------------------------------------------
# Elementwise bodies (run inside the kernel on native-dtype tiles).
# ----------------------------------------------------------------------------
def _l1_elem(y, t):
    return jnp.abs(y.astype(jnp.float32) - t.astype(jnp.float32))


def _log_sigmoid_eps_elem(x):
    x = x.astype(jnp.float32)
    return jnp.log(1.0 / (1.0 + jnp.exp(-x)) + 1e-9)


def l1_sum(y, t):
    """nn.L1Loss(reduction='sum')."""
    return _pallas_sum(_l1_elem, [y, t], flops_per_elem=3)


def log_sigmoid_eps_sum(x):
    return _pallas_sum(_log_sigmoid_eps_elem, [x],
                       flops_per_elem=6, transcendentals_per_elem=2)


# ----------------------------------------------------------------------------
# Bilinear (align_corners=True) resize — plain JAX, separable matmul form.
# ----------------------------------------------------------------------------
def _interp_matrix_1d(out_size, in_size):
    m = np.zeros((out_size, in_size), dtype=np.float32)
    if out_size == 1 or in_size == 1:
        m[:, 0] = 1.0
        return jnp.asarray(m)
    scale = (in_size - 1) / (out_size - 1)
    for o in range(out_size):
        src = o * scale
        lo = min(int(math.floor(src)), in_size - 1)
        hi = min(lo + 1, in_size - 1)
        w = src - lo
        m[o, lo] += 1.0 - w
        m[o, hi] += w
    return jnp.asarray(m)


def bilinear_resize_align_corners(x, out_h, out_w):
    """F.interpolate(x, (out_h, out_w), mode='bilinear', align_corners=True)."""
    # TODO(synk): resize stays in plain JAX (static interpolation matrices),
    # not a Pallas kernel; only the reductions are Pallas.
    _, _, h, w = x.shape
    if (h, w) == (out_h, out_w):
        return x
    mh = _interp_matrix_1d(out_h, h)
    mw = _interp_matrix_1d(out_w, w)
    xf = x.astype(jnp.float32)
    xf = jnp.einsum('oh,bchw->bcow', mh, xf)
    xf = jnp.einsum('pw,bcow->bcop', mw, xf)
    return xf


# ----------------------------------------------------------------------------
# GeneratorLoss forward (same semantics as the PyTorch module).
# ----------------------------------------------------------------------------
def pyr_loss(Y_list, T_list, weight=1.0):
    n = len(Y_list)
    loss = jnp.float32(0.0)
    for m in range(n - 1):
        t_m = bilinear_resize_align_corners(
            T_list[m], Y_list[m].shape[2], Y_list[m].shape[3])
        loss = loss + weight * (2.0 ** (n - m - 2)) * l1_sum(Y_list[m], t_m) \
            / Y_list[m].shape[0]
    return loss


def rec_loss(Y_list, T_list, weight=1.0):
    return weight * l1_sum(Y_list[-1], T_list[-1]) / Y_list[-1].shape[0]


def adv_loss(P_Y, size=256, weight=1.0):
    mean_ls = log_sigmoid_eps_sum(P_Y) / jnp.float32(P_Y.size)
    return -weight * 12.0 * size * size * mean_ls


def generator_loss(Y_list, T_list, P_Y=None, size=256,
                   pyr_weight=1.0, rec_weight=1.0, adv_weight=1.0,
                   withoutadvloss=False):
    pyrloss = pyr_loss(Y_list, T_list, pyr_weight)
    recloss = rec_loss(Y_list, T_list, rec_weight)
    if withoutadvloss:
        return recloss, pyrloss, pyrloss + recloss
    advloss = adv_loss(P_Y, size, adv_weight)
    return recloss, pyrloss, advloss, pyrloss + recloss + advloss


if __name__ == "__main__":
    key = jax.random.PRNGKey(0)
    k0, k1, k2, k3, k4 = jax.random.split(key, 5)

    B, C = 2, 4
    # Two-level pyramid: outputs at (8,8) and (16,16); targets at (16,16).
    Y_list = [jax.random.normal(k0, (B, C, 8, 8), jnp.float32),
              jax.random.normal(k1, (B, C, 16, 16), jnp.float32)]
    T_list = [jax.random.normal(k2, (B, C, 16, 16), jnp.float32),
              jax.random.normal(k3, (B, C, 16, 16), jnp.float32)]
    P_Y = jax.random.normal(k4, (B, 1, 8, 8), jnp.float32)
    SIZE = 16

    loss_fn = jax.jit(functools.partial(generator_loss, size=SIZE))
    recloss, pyrloss, advloss, myloss = jax.block_until_ready(
        loss_fn(Y_list, T_list, P_Y))

    # Pure-JAX reference (same math as the PyTorch module).
    n_lv = len(Y_list)
    ref_pyr = jnp.float32(0.0)
    for m in range(n_lv - 1):
        t_m = bilinear_resize_align_corners(
            T_list[m], Y_list[m].shape[2], Y_list[m].shape[3])
        ref_pyr = ref_pyr + (2.0 ** (n_lv - m - 2)) * jnp.sum(
            jnp.abs(Y_list[m] - t_m)) / Y_list[m].shape[0]
    ref_rec = jnp.sum(jnp.abs(Y_list[-1] - T_list[-1])) / Y_list[-1].shape[0]
    ref_adv = -12.0 * SIZE * SIZE * jnp.mean(
        jnp.log(1.0 / (1.0 + jnp.exp(-P_Y)) + 1e-9))
    ref_total = ref_rec + ref_pyr + ref_adv

    assert jnp.allclose(recloss, ref_rec, rtol=1e-5, atol=1e-4), (recloss, ref_rec)
    assert jnp.allclose(pyrloss, ref_pyr, rtol=1e-5, atol=1e-4), (pyrloss, ref_pyr)
    assert jnp.allclose(advloss, ref_adv, rtol=1e-5, atol=1e-3), (advloss, ref_adv)
    assert jnp.allclose(myloss, ref_total, rtol=1e-5, atol=1e-3), (myloss, ref_total)

    print("KERNEL_OK")
</pallas_src>

<mosaic_0001>
module attributes {stable_mosaic.version = 11 : i64} {
  func.func @_sum_kernel(%arg0: i32, %arg1: i32, %arg2: memref<8x128xf32, #tpu.memory_space<vmem>>, %arg3: memref<8x128xf32, #tpu.memory_space<vmem>>, %arg4: memref<1x8x128xf32, #tpu.memory_space<vmem>>) attributes {dimension_semantics = [#tpu.dimension_semantics<parallel>, #tpu.dimension_semantics<arbitrary>], iteration_bounds = array<i64: 1, 1>, scalar_prefetch = 0 : i64, scratch_operands = 0 : i64, tpu.core_type = #tpu.core_type<tc>, window_params = [{transform_indices = @transform_0, window_bounds = array<i64: 8, 128>}, {transform_indices = @transform_1, window_bounds = array<i64: 8, 128>}, {transform_indices = @transform_2, window_bounds = array<i64: 1, 8, 128>}]} {
    %c0_i32 = arith.constant 0 : i32
    %0 = arith.cmpi eq, %arg1, %c0_i32 : i32
    %1 = arith.extui %0 : i1 to i32
    %c0_i32_0 = arith.constant 0 : i32
    %2 = arith.cmpi ne, %1, %c0_i32_0 : i32
    scf.if %2 {
      %cst_11 = arith.constant 0.000000e+00 : f32
      %23 = vector.broadcast %cst_11 : f32 to vector<1x8x128xf32>
      %c0_12 = arith.constant 0 : index
      %c0_13 = arith.constant 0 : index
      %c0_14 = arith.constant 0 : index
      %24 = vector.load %arg4[%c0_12, %c0_13, %c0_14] : memref<1x8x128xf32, #tpu.memory_space<vmem>>, vector<1x8x128xf32>
      tpu.vector_store %arg4[%c0_12, %c0_13, %c0_14], %23 {strides = array<i32>} : memref<1x8x128xf32, #tpu.memory_space<vmem>>, vector<1x8x128xf32>,
    } else {
    }
    %c0 = arith.constant 0 : index
    %c0_1 = arith.constant 0 : index
    %3 = vector.load %arg2[%c0, %c0_1] : memref<8x128xf32, #tpu.memory_space<vmem>>, vector<8x128xf32>
    %c0_2 = arith.constant 0 : index
    %c0_3 = arith.constant 0 : index
    %4 = vector.load %arg3[%c0_2, %c0_3] : memref<8x128xf32, #tpu.memory_space<vmem>>, vector<8x128xf32>
    %5 = arith.subf %3, %4 : vector<8x128xf32>
    %6 = math.absf %5 : vector<8x128xf32>
    %c1_i32 = arith.constant 1 : i32
    %7 = arith.muli %arg0, %c1_i32 : i32
    %8 = arith.addi %7, %arg1 : i32
    %c8_i32 = arith.constant 8 : i32
    %9 = arith.muli %8, %c8_i32 : i32
    %10 = tpu.iota {dimensions = array<i32: 0>} : vector<8x128xi32>
    %11 = vector.broadcast %9 : i32 to vector<8x128xi32>
    %12 = arith.addi %11, %10 : vector<8x128xi32>
    %c4_i32 = arith.constant 4 : i32
    %13 = vector.broadcast %c4_i32 : i32 to vector<8x128xi32>
    %14 = arith.cmpi slt, %12, %13 : vector<8x128xi32>
    %cst = arith.constant 0.000000e+00 : f32
    %15 = vector.broadcast %cst : f32 to vector<8x128xf32>
    %16 = arith.select %14, %6, %15 : vector<8x128xi1>, vector<8x128xf32>
    %c0_4 = arith.constant 0 : index
    %c0_5 = arith.constant 0 : index
    %c0_6 = arith.constant 0 : index
    %17 = vector.load %arg4[%c0_4, %c0_5, %c0_6] : memref<1x8x128xf32, #tpu.memory_space<vmem>>, vector<1x8x128xf32>
    %18 = vector.shape_cast %16 : vector<8x128xf32> to vector<1x8x128xf32>
    %cst_7 = arith.constant dense<0.000000e+00> : vector<8x128xf32>
    %19 = vector.multi_reduction <add>, %18, %cst_7 [0] : vector<1x8x128xf32> to vector<8x128xf32>
    %20 = vector.shape_cast %19 : vector<8x128xf32> to vector<1x8x128xf32>
    %21 = arith.addf %17, %20 : vector<1x8x128xf32>
    %c0_8 = arith.constant 0 : index
    %c0_9 = arith.constant 0 : index
    %c0_10 = arith.constant 0 : index
    %22 = vector.load %arg4[%c0_8, %c0_9, %c0_10] : memref<1x8x128xf32, #tpu.memory_space<vmem>>, vector<1x8x128xf32>
    tpu.vector_store %arg4[%c0_8, %c0_9, %c0_10], %21 {strides = array<i32>} : memref<1x8x128xf32, #tpu.memory_space<vmem>>, vector<1x8x128xf32>,
    return
  }
  func.func @transform_0(%arg0: i32, %arg1: i32) -> (i32, i32) {
    %c1_i32 = arith.constant 1 : i32
    %0 = arith.muli %arg0, %c1_i32 : i32
    %1 = arith.addi %0, %arg1 : i32
    %c0_i32 = arith.constant 0 : i32
    %c0_i32_0 = arith.constant 0 : i32
    return %1, %c0_i32 : i32, i32
  }
  func.func @transform_1(%arg0: i32, %arg1: i32) -> (i32, i32) {
    %c1_i32 = arith.constant 1 : i32
    %0 = arith.muli %arg0, %c1_i32 : i32
    %1 = arith.addi %0, %arg1 : i32
    %c0_i32 = arith.constant 0 : i32
    %c0_i32_0 = arith.constant 0 : i32
    return %1, %c0_i32 : i32, i32
  }
  func.func @transform_2(%arg0: i32, %arg1: i32) -> (i32, i32, i32) {
    %c0_i32 = arith.constant 0 : i32
    %c0_i32_0 = arith.constant 0 : i32
    %c0_i32_1 = arith.constant 0 : i32
    return %arg0, %c0_i32, %c0_i32_0 : i32, i32, i32
  }
}

module attributes {stable_mosaic.version = 11 : i64} {
  func.func @_sum_kernel(%arg0: i32, %arg1: i32, %arg2: memref<16x128xf32, #tpu.memory_space<vmem>>, %arg3: memref<16x128xf32, #tpu.memory_space<vmem>>, %arg4: memref<1x8x128xf32, #tpu.memory_space<vmem>>) attributes {dimension_semantics = [#tpu.dimension_semantics<parallel>, #tpu.dimension_semantics<arbitrary>], iteration_bounds = array<i64: 1, 1>, scalar_prefetch = 0 : i64, scratch_operands = 0 : i64, tpu.core_type = #tpu.core_type<tc>, window_params = [{transform_indices = @transform_0, window_bounds = array<i64: 16, 128>}, {transform_indices = @transform_1, window_bounds = array<i64: 16, 128>}, {transform_indices = @transform_2, window_bounds = array<i64: 1, 8, 128>}]} {
    %c0_i32 = arith.constant 0 : i32
    %0 = arith.cmpi eq, %arg1, %c0_i32 : i32
    %1 = arith.extui %0 : i1 to i32
    %c0_i32_0 = arith.constant 0 : i32
    %2 = arith.cmpi ne, %1, %c0_i32_0 : i32
    scf.if %2 {
      %cst_10 = arith.constant 0.000000e+00 : f32
      %13 = vector.broadcast %cst_10 : f32 to vector<1x8x128xf32>
      %c0_11 = arith.constant 0 : index
      %c0_12 = arith.constant 0 : index
      %c0_13 = arith.constant 0 : index
      %14 = vector.load %arg4[%c0_11, %c0_12, %c0_13] : memref<1x8x128xf32, #tpu.memory_space<vmem>>, vector<1x8x128xf32>
      tpu.vector_store %arg4[%c0_11, %c0_12, %c0_13], %13 {strides = array<i32>} : memref<1x8x128xf32, #tpu.memory_space<vmem>>, vector<1x8x128xf32>,
    } else {
    }
    %c0 = arith.constant 0 : index
    %c0_1 = arith.constant 0 : index
    %3 = vector.load %arg2[%c0, %c0_1] : memref<16x128xf32, #tpu.memory_space<vmem>>, vector<16x128xf32>
    %c0_2 = arith.constant 0 : index
    %c0_3 = arith.constant 0 : index
    %4 = vector.load %arg3[%c0_2, %c0_3] : memref<16x128xf32, #tpu.memory_space<vmem>>, vector<16x128xf32>
    %5 = arith.subf %3, %4 : vector<16x128xf32>
    %6 = math.absf %5 : vector<16x128xf32>
    %c0_4 = arith.constant 0 : index
    %c0_5 = arith.constant 0 : index
    %c0_6 = arith.constant 0 : index
    %7 = vector.load %arg4[%c0_4, %c0_5, %c0_6] : memref<1x8x128xf32, #tpu.memory_space<vmem>>, vector<1x8x128xf32>
    %8 = vector.shape_cast %6 : vector<16x128xf32> to vector<2x8x128xf32>
    %cst = arith.constant dense<0.000000e+00> : vector<8x128xf32>
    %9 = vector.multi_reduction <add>, %8, %cst [0] : vector<2x8x128xf32> to vector<8x128xf32>
    %10 = vector.shape_cast %9 : vector<8x128xf32> to vector<1x8x128xf32>
    %11 = arith.addf %7, %10 : vector<1x8x128xf32>
    %c0_7 = arith.constant 0 : index
    %c0_8 = arith.constant 0 : index
    %c0_9 = arith.constant 0 : index
    %12 = vector.load %arg4[%c0_7, %c0_8, %c0_9] : memref<1x8x128xf32, #tpu.memory_space<vmem>>, vector<1x8x128xf32>
    tpu.vector_store %arg4[%c0_7, %c0_8, %c0_9], %11 {strides = array<i32>} : memref<1x8x128xf32, #tpu.memory_space<vmem>>, vector<1x8x128xf32>,
    return
  }
  func.func @transform_0(%arg0: i32, %arg1: i32) -> (i32, i32) {
    %c1_i32 = arith.constant 1 : i32
    %0 = arith.muli %arg0, %c1_i32 : i32
    %1 = arith.addi %0, %arg1 : i32
    %c0_i32 = arith.constant 0 : i32
    %c0_i32_0 = arith.constant 0 : i32
    return %1, %c0_i32 : i32, i32
  }
  func.func @transform_1(%arg0: i32, %arg1: i32) -> (i32, i32) {
    %c1_i32 = arith.constant 1 : i32
    %0 = arith.muli %arg0, %c1_i32 : i32
    %1 = arith.addi %0, %arg1 : i32
    %c0_i32 = arith.constant 0 : i32
    %c0_i32_0 = arith.constant 0 : i32
    return %1, %c0_i32 : i32, i32
  }
  func.func @transform_2(%arg0: i32, %arg1: i32) -> (i32, i32, i32) {
    %c0_i32 = arith.constant 0 : i32
    %c0_i32_0 = arith.constant 0 : i32
    %c0_i32_1 = arith.constant 0 : i32
    return %arg0, %c0_i32, %c0_i32_0 : i32, i32, i32
  }
}

module attributes {stable_mosaic.version = 11 : i64} {
  func.func @_sum_kernel(%arg0: i32, %arg1: i32, %arg2: memref<8x128xf32, #tpu.memory_space<vmem>>, %arg3: memref<1x8x128xf32, #tpu.memory_space<vmem>>) attributes {dimension_semantics = [#tpu.dimension_semantics<parallel>, #tpu.dimension_semantics<arbitrary>], iteration_bounds = array<i64: 1, 1>, scalar_prefetch = 0 : i64, scratch_operands = 0 : i64, tpu.core_type = #tpu.core_type<tc>, window_params = [{transform_indices = @transform_0, window_bounds = array<i64: 8, 128>}, {transform_indices = @transform_1, window_bounds = array<i64: 1, 8, 128>}]} {
    %c0_i32 = arith.constant 0 : i32
    %0 = arith.cmpi eq, %arg1, %c0_i32 : i32
    %1 = arith.extui %0 : i1 to i32
    %c0_i32_0 = arith.constant 0 : i32
    %2 = arith.cmpi ne, %1, %c0_i32_0 : i32
    scf.if %2 {
      %cst_14 = arith.constant 0.000000e+00 : f32
      %30 = vector.broadcast %cst_14 : f32 to vector<1x8x128xf32>
      %c0_15 = arith.constant 0 : index
      %c0_16 = arith.constant 0 : index
      %c0_17 = arith.constant 0 : index
      %31 = vector.load %arg3[%c0_15, %c0_16, %c0_17] : memref<1x8x128xf32, #tpu.memory_space<vmem>>, vector<1x8x128xf32>
      tpu.vector_store %arg3[%c0_15, %c0_16, %c0_17], %30 {strides = array<i32>} : memref<1x8x128xf32, #tpu.memory_space<vmem>>, vector<1x8x128xf32>,
    } else {
    }
    %c0 = arith.constant 0 : index
    %c0_1 = arith.constant 0 : index
    %3 = vector.load %arg2[%c0, %c0_1] : memref<8x128xf32, #tpu.memory_space<vmem>>, vector<8x128xf32>
    %cst = arith.constant 0.000000e+00 : f32
    %4 = vector.broadcast %cst : f32 to vector<8x128xf32>
    %5 = arith.subf %4, %3 : vector<8x128xf32>
    %6 = math.exp %5 : vector<8x128xf32>
    %cst_2 = arith.constant 1.000000e+00 : f32
    %7 = vector.broadcast %cst_2 : f32 to vector<8x128xf32>
    %8 = arith.addf %7, %6 : vector<8x128xf32>
    %cst_3 = arith.constant 1.000000e+00 : f32
    %9 = vector.broadcast %cst_3 : f32 to vector<8x128xf32>
    %10 = arith.divf %9, %8 : vector<8x128xf32>
    %cst_4 = arith.constant 9.99999971E-10 : f32
    %11 = vector.broadcast %cst_4 : f32 to vector<8x128xf32>
    %12 = arith.addf %10, %11 : vector<8x128xf32>
    %13 = math.log %12 : vector<8x128xf32>
    %c1_i32 = arith.constant 1 : i32
    %14 = arith.muli %arg0, %c1_i32 : i32
    %15 = arith.addi %14, %arg1 : i32
    %c8_i32 = arith.constant 8 : i32
    %16 = arith.muli %15, %c8_i32 : i32
    %17 = tpu.iota {dimensions = array<i32: 0>} : vector<8x128xi32>
    %18 = vector.broadcast %16 : i32 to vector<8x128xi32>
    %19 = arith.addi %18, %17 : vector<8x128xi32>
    %c1_i32_5 = arith.constant 1 : i32
    %20 = vector.broadcast %c1_i32_5 : i32 to vector<8x128xi32>
    %21 = arith.cmpi slt, %19, %20 : vector<8x128xi32>
    %cst_6 = arith.constant 0.000000e+00 : f32
    %22 = vector.broadcast %cst_6 : f32 to vector<8x128xf32>
    %23 = arith.select %21, %13, %22 : vector<8x128xi1>, vector<8x128xf32>
    %c0_7 = arith.constant 0 : index
    %c0_8 = arith.constant 0 : index
    %c0_9 = arith.constant 0 : index
    %24 = vector.load %arg3[%c0_7, %c0_8, %c0_9] : memref<1x8x128xf32, #tpu.memory_space<vmem>>, vector<1x8x128xf32>
    %25 = vector.shape_cast %23 : vector<8x128xf32> to vector<1x8x128xf32>
    %cst_10 = arith.constant dense<0.000000e+00> : vector<8x128xf32>
    %26 = vector.multi_reduction <add>, %25, %cst_10 [0] : vector<1x8x128xf32> to vector<8x128xf32>
    %27 = vector.shape_cast %26 : vector<8x128xf32> to vector<1x8x128xf32>
    %28 = arith.addf %24, %27 : vector<1x8x128xf32>
    %c0_11 = arith.constant 0 : index
    %c0_12 = arith.constant 0 : index
    %c0_13 = arith.constant 0 : index
    %29 = vector.load %arg3[%c0_11, %c0_12, %c0_13] : memref<1x8x128xf32, #tpu.memory_space<vmem>>, vector<1x8x128xf32>
    tpu.vector_store %arg3[%c0_11, %c0_12, %c0_13], %28 {strides = array<i32>} : memref<1x8x128xf32, #tpu.memory_space<vmem>>, vector<1x8x128xf32>,
    return
  }
  func.func @transform_0(%arg0: i32, %arg1: i32) -> (i32, i32) {
    %c1_i32 = arith.constant 1 : i32
    %0 = arith.muli %arg0, %c1_i32 : i32
    %1 = arith.addi %0, %arg1 : i32
    %c0_i32 = arith.constant 0 : i32
    %c0_i32_0 = arith.constant 0 : i32
    return %1, %c0_i32 : i32, i32
  }
  func.func @transform_1(%arg0: i32, %arg1: i32) -> (i32, i32, i32) {
    %c0_i32 = arith.constant 0 : i32
    %c0_i32_0 = arith.constant 0 : i32
    %c0_i32_1 = arith.constant 0 : i32
    return %arg0, %c0_i32, %c0_i32_0 : i32, i32, i32
  }
}

</mosaic_0001>

<bundles_post_ra>
// kernel: generator_loss.3
= control target key start
LH: loop header
LB: loop body
LE: loop exit
PB: predicated region body
PF: predicated region fallthrough
CT: control target
= control target key end

     0   :  { %v56_v0 = vlaneseq  ;;  %s107_s0 = inlined_call_operand.vmem [shape: f32[8,128], index: 0, kind: input, shape index: {}]   ;;  %s108_s1 = inlined_call_operand.vmem [shape: f32[8,128], index: 1, kind: input, shape index: {}]   ;;  %s109_s2 = inlined_call_operand.vmem [shape: f32[1,8,128], index: 2, kind: output, shape index: {}]  }
   0x1   :  { %v50_v1 = vld [vmem:[%s107_s0] sm:$0xff] }
   0x2   :  { %v51_v2 = vld [vmem:[%s108_s1] sm:$0xff]  ;;  %v57_v4 = vshrl.u32 %v56_v0, 7 }
   0x3   :  { %v52_v3 = vsub.f32 %v50_v1, %v51_v2 }
   0x4   :  { %vm60_vm0 = vcmp.lt.s32.totalorder %v57_v4, 4 }
   0x5   :  { %v53_v5 = vand.u32 2147483647, %v52_v3 }
   0x7   :  { %v61_v6 = vsel %vm60_vm0, %v53_v5, 0.0 }
   0x8   :  { %65 = vst [vmem:[%s109_s2] sm:$0xff] %v61_v6 }

// kernel: generator_loss.4
= control target key start
LH: loop header
LB: loop body
LE: loop exit
PB: predicated region body
PF: predicated region fallthrough
CT: control target
= control target key end

     0   :  { %s119_s0 = inlined_call_operand.vmem [shape: f32[16,128], index: 0, kind: input, shape index: {}]   ;;  %s120_s1 = inlined_call_operand.vmem [shape: f32[16,128], index: 1, kind: input, shape index: {}]   ;;  %s121_s2 = inlined_call_operand.vmem [shape: f32[1,8,128], index: 2, kind: output, shape index: {}]  }
   0x1   :  { %v60_v0 = vld [vmem:[%s119_s0] sm:$0xff]  ;;  %v61_v1 = vld [vmem:[%s119_s0 + $0x8] sm:$0xff] }
   0x2   :  { %v62_v2 = vld [vmem:[%s120_s1] sm:$0xff]  ;;  %v63_v3 = vld [vmem:[%s120_s1 + $0x8] sm:$0xff] }
   0x3   :  { %v64_v4 = vsub.f32 %v60_v0, %v62_v2  ;;  %v65_v5 = vsub.f32 %v61_v1, %v63_v3 }
   0x5   :  { %v66_v6 = vand.u32 2147483647, %v64_v4  ;;  %v67_v7 = vand.u32 2147483647, %v65_v5 }
   0x7   :  { %v69_v8 = vadd.f32 %v67_v7, %v66_v6 }
   0x9   :  { %71 = vst [vmem:[%s121_s2] sm:$0xff] %v69_v8 }

// kernel: generator_loss.5
= control target key start
LH: loop header
LB: loop body
LE: loop exit
PB: predicated region body
PF: predicated region fallthrough
CT: control target
= control target key end

     0   :  { %v42_v7 = vlaneseq  ;;  %s85_s0 = inlined_call_operand.vmem [shape: f32[8,128], index: 0, kind: input, shape index: {}]   ;;  %s86_s1 = inlined_call_operand.vmem [shape: f32[1,8,128], index: 1, kind: output, shape index: {}]  }
   0x1   :  { %v30_v0 = vld [vmem:[%s85_s0] sm:$0xff] }
   0x2   :  { %v31_v1 = vsub.f32 0.0, %v30_v0  ;;  %v43_v8 = vshrl.u32 %v42_v7, 7 }
   0x4   :  { %v32_v2 = vmul.f32 1.442695, %v31_v1  ;;  %vm46_vm0 = vcmp.lt.s32.totalorder %v43_v8, 1 }
   0x6   :  { %63 = vpow2.f32 %v32_v2 }
  0x10   :  { %v64_v3 = vpop.eup %63 }
  0x11   :  { %v34_v4 = vadd.f32 1.0, %v64_v3 }
  0x13   :  { %65 = vrcp.f32 %v34_v4 }
  0x1d   :  { %v66_v5 = vpop.eup %65 }
  0x1e   :  { %v37_v6 = vadd.f32 1e-09, %v66_v5 }
  0x20   :  { %67 = vlog2.f32 %v37_v6 }
  0x2a   :  { %v68_v9 = vpop.eup %67 }
  0x2b   :  { %v39_v10 = vmul.f32 0.6931472, %v68_v9 }
  0x2d   :  { %v47_v11 = vsel %vm46_vm0, %v39_v10, 0.0 }
  0x2e   :  { %51 = vst [vmem:[%s86_s1] sm:$0xff] %v47_v11 }

</bundles_post_ra>
